<compile_context>
chip_gen: v6e
topology: v6e:2x2x1
jax: 0.10.0
libtpu: 0.0.40
codegen_flags: <defaults>
</compile_context>

<pallas_src>
import jax
import jax.numpy as jnp
from jax.experimental import pallas as pl
from jax.experimental.pallas import tpu as pltpu

SUBLANE = 8  # vreg sublane width (second-to-last dim alignment)


def _round_up(x, m):
    return (x + m - 1) // m * m


def actor_kernel(s_ref, w1_ref, b1_ref, w2_ref, b2_ref, w3_ref, b3_ref, o_ref):
    # All operands f32; matmuls accumulate in f32 on the MXU.  The kernel is
    # HBM-bound at these shapes, so f32 compute is free and maximally accurate.
    h1 = jnp.dot(s_ref[...], w1_ref[...], preferred_element_type=jnp.float32)
    h1 = jnp.maximum(h1 + b1_ref[...], 0.0)

    h2 = jnp.dot(h1, w2_ref[...], preferred_element_type=jnp.float32)
    h2 = jnp.maximum(h2 + b2_ref[...], 0.0)

    a = jnp.dot(h2, w3_ref[...], preferred_element_type=jnp.float32)
    o_ref[...] = jnp.tanh(a + b3_ref[...]).astype(o_ref.dtype)


def init_actor_params(key, state_dim, action_dim, mid_dim):
    """torch.nn.Linear-style init (U(-1/sqrt(in), 1/sqrt(in))).

    Weights are stored transposed: [in_features, out_features]; biases [1, out]."""
    def linear(k, fan_in, fan_out):
        kw, kb = jax.random.split(k)
        bound = 1.0 / jnp.sqrt(jnp.float32(fan_in))
        w = jax.random.uniform(kw, (fan_in, fan_out), jnp.float32, -bound, bound)
        b = jax.random.uniform(kb, (1, fan_out), jnp.float32, -bound, bound)
        return w, b

    k1, k2, k3 = jax.random.split(key, 3)
    w1, b1 = linear(k1, state_dim, mid_dim)
    w2, b2 = linear(k2, mid_dim, mid_dim)
    w3, b3 = linear(k3, mid_dim, action_dim)
    return {"w1": w1, "b1": b1, "w2": w2, "b2": b2, "w3": w3, "b3": b3}


def actor_forward(s, params, *, tile_b_max=1024):
    """s: [batch, state_dim] f32.  params: dict from init_actor_params.
    Returns tanh(MLP(s)) as [batch, action_dim] f32."""
    w1, b1, w2, b2, w3, b3 = (params[k] for k in ("w1", "b1", "w2", "b2", "w3", "b3"))
    batch, state_dim = s.shape
    mid_dim = w1.shape[1]
    action_dim = w3.shape[1]

    # Batch tile: multiple of 8 sublanes, at least 2 grid steps for large
    # batches (so the "parallel" axis actually engages both v7x TensorCores),
    # capped at tile_b_max.  VMEM is never the limiter at these feature dims.
    b8 = _round_up(max(batch, 1), SUBLANE)
    tile_b = max(SUBLANE, min(tile_b_max, _round_up(pl.cdiv(b8, 2), SUBLANE)))
    b_pad = _round_up(batch, tile_b)
    grid = (b_pad // tile_b,)

    # Only row-pad the batch (cheap, rows of width state_dim) when needed so
    # the grid divides evenly; no lane padding, no dtype conversion pass.
    s_in = s if b_pad == batch else jnp.pad(s, ((0, b_pad - batch), (0, 0)))

    flops = 2 * b_pad * (state_dim * mid_dim + mid_dim * mid_dim + mid_dim * action_dim)
    bytes_accessed = (b_pad * state_dim * 4
                      + (w1.size + w2.size + w3.size + b1.size + b2.size + b3.size) * 4
                      + b_pad * action_dim * 4)
    cost = pl.CostEstimate(flops=flops,
                           transcendentals=b_pad * action_dim,
                           bytes_accessed=bytes_accessed)

    # Weights / biases: full-array blocks, constant index_map -> stay resident
    # in VMEM across the whole batch grid (never re-fetched).
    def resident(arr):
        return pl.BlockSpec(arr.shape, lambda i: (0, 0))

    out = pl.pallas_call(
        actor_kernel,
        out_shape=jax.ShapeDtypeStruct((b_pad, action_dim), jnp.float32),
        grid=grid,
        in_specs=[
            pl.BlockSpec((tile_b, state_dim), lambda i: (i, 0)),  # streamed states
            resident(w1), resident(b1),
            resident(w2), resident(b2),
            resident(w3), resident(b3),
        ],
        out_specs=pl.BlockSpec((tile_b, action_dim), lambda i: (i, 0)),
        compiler_params=pltpu.CompilerParams(
            dimension_semantics=("parallel",)),  # megacore-shard batch on v7x
        cost_estimate=cost,
    )(s_in, w1, b1, w2, b2, w3, b3)

    return out if b_pad == batch else out[:batch]


def actor_reference(s, params):
    """Pure-JAX f32 reference for correctness checking."""
    h1 = jnp.maximum(s @ params["w1"] + params["b1"], 0.0)
    h2 = jnp.maximum(h1 @ params["w2"] + params["b2"], 0.0)
    return jnp.tanh(h2 @ params["w3"] + params["b3"])


# TODO(synk): get__noise_action / get__noise_action_fix (stochastic exploration
# noise) are not implemented here; they would need pltpu.prng_* in a separate kernel.

if __name__ == "__main__":
    key = jax.random.PRNGKey(0)
    k_param, k_state, k_big = jax.random.split(key, 3)

    batch, state_dim, action_dim, mid_dim = 2, 16, 8, 32

    params = init_actor_params(k_param, state_dim, action_dim, mid_dim)

    # Small-shape check (single grid step).
    s = jax.random.normal(k_state, (batch, state_dim), jnp.float32)
    out = jax.block_until_ready(actor_forward(s, params))
    ref = actor_reference(s, params)
    assert out.shape == (batch, action_dim)
    assert jnp.allclose(out, ref, atol=2e-2, rtol=2e-2), "mismatch vs reference (small)"

    # Multi-tile check (ragged last tile) to exercise the batch pipeline.
    big_batch = 300
    s_big = jax.random.normal(k_big, (big_batch, state_dim), jnp.float32)
    out_big = jax.block_until_ready(
        actor_forward(s_big, params, tile_b_max=128))
    ref_big = actor_reference(s_big, params)
    assert out_big.shape == (big_batch, action_dim)
    assert jnp.allclose(out_big, ref_big, atol=2e-2, rtol=2e-2), "mismatch vs reference (big)"

    # Default-tiling multi-step check (>=2 grid steps path).
    out_def = jax.block_until_ready(actor_forward(s_big, params))
    assert out_def.shape == (big_batch, action_dim)
    assert jnp.allclose(out_def, ref_big, atol=2e-2, rtol=2e-2), "mismatch vs reference (default tiles)"

    print("KERNEL_OK")
</pallas_src>

<mosaic_0001>
module attributes {stable_mosaic.version = 11 : i64} {
  func.func @actor_kernel(%arg0: i32, %arg1: memref<8x16xf32, #tpu.memory_space<vmem>>, %arg2: memref<16x32xf32, #tpu.memory_space<vmem>>, %arg3: memref<1x32xf32, #tpu.memory_space<vmem>>, %arg4: memref<32x32xf32, #tpu.memory_space<vmem>>, %arg5: memref<1x32xf32, #tpu.memory_space<vmem>>, %arg6: memref<32x8xf32, #tpu.memory_space<vmem>>, %arg7: memref<1x8xf32, #tpu.memory_space<vmem>>, %arg8: memref<8x8xf32, #tpu.memory_space<vmem>>) attributes {dimension_semantics = [#tpu.dimension_semantics<parallel>], iteration_bounds = array<i64: 1>, scalar_prefetch = 0 : i64, scratch_operands = 0 : i64, tpu.core_type = #tpu.core_type<tc>, window_params = [{transform_indices = @transform_0, window_bounds = array<i64: 8, 16>}, {pipeline_mode = #tpu.pipeline_mode<synchronous>, transform_indices = @transform_1, window_bounds = array<i64: 16, 32>}, {pipeline_mode = #tpu.pipeline_mode<synchronous>, transform_indices = @transform_2, window_bounds = array<i64: 1, 32>}, {pipeline_mode = #tpu.pipeline_mode<synchronous>, transform_indices = @transform_3, window_bounds = array<i64: 32, 32>}, {pipeline_mode = #tpu.pipeline_mode<synchronous>, transform_indices = @transform_4, window_bounds = array<i64: 1, 32>}, {pipeline_mode = #tpu.pipeline_mode<synchronous>, transform_indices = @transform_5, window_bounds = array<i64: 32, 8>}, {pipeline_mode = #tpu.pipeline_mode<synchronous>, transform_indices = @transform_6, window_bounds = array<i64: 1, 8>}, {transform_indices = @transform_7, window_bounds = array<i64: 8, 8>}]} {
    %c0 = arith.constant 0 : index
    %c0_0 = arith.constant 0 : index
    %0 = vector.load %arg1[%c0, %c0_0] : memref<8x16xf32, #tpu.memory_space<vmem>>, vector<8x16xf32>
    %c0_1 = arith.constant 0 : index
    %c0_2 = arith.constant 0 : index
    %1 = vector.load %arg2[%c0_1, %c0_2] : memref<16x32xf32, #tpu.memory_space<vmem>>, vector<16x32xf32>
    %cst = arith.constant dense<0.000000e+00> : vector<8x32xf32>
    %2 = tpu.matmul %0, %1, %cst {dimension_numbers = #tpu.dot_dimension_numbers<[1], [0], [0], [1], [0, 0, 1, 1], [], []>} : vector<8x16xf32>, vector<16x32xf32>, vector<8x32xf32> -> vector<8x32xf32>
    %c0_3 = arith.constant 0 : index
    %c0_4 = arith.constant 0 : index
    %3 = vector.load %arg3[%c0_3, %c0_4] : memref<1x32xf32, #tpu.memory_space<vmem>>, vector<1x32xf32>
    %4 = vector.broadcast %3 : vector<1x32xf32> to vector<8x32xf32>
    %5 = arith.addf %2, %4 : vector<8x32xf32>
    %cst_5 = arith.constant 0.000000e+00 : f32
    %6 = vector.broadcast %cst_5 : f32 to vector<8x32xf32>
    %7 = arith.maximumf %5, %6 : vector<8x32xf32>
    %c0_6 = arith.constant 0 : index
    %c0_7 = arith.constant 0 : index
    %8 = vector.load %arg4[%c0_6, %c0_7] : memref<32x32xf32, #tpu.memory_space<vmem>>, vector<32x32xf32>
    %cst_8 = arith.constant dense<0.000000e+00> : vector<8x32xf32>
    %9 = tpu.matmul %7, %8, %cst_8 {dimension_numbers = #tpu.dot_dimension_numbers<[1], [0], [0], [1], [0, 0, 1, 1], [], []>} : vector<8x32xf32>, vector<32x32xf32>, vector<8x32xf32> -> vector<8x32xf32>
    %c0_9 = arith.constant 0 : index
    %c0_10 = arith.constant 0 : index
    %10 = vector.load %arg5[%c0_9, %c0_10] : memref<1x32xf32, #tpu.memory_space<vmem>>, vector<1x32xf32>
    %11 = vector.broadcast %10 : vector<1x32xf32> to vector<8x32xf32>
    %12 = arith.addf %9, %11 : vector<8x32xf32>
    %cst_11 = arith.constant 0.000000e+00 : f32
    %13 = vector.broadcast %cst_11 : f32 to vector<8x32xf32>
    %14 = arith.maximumf %12, %13 : vector<8x32xf32>
    %c0_12 = arith.constant 0 : index
    %c0_13 = arith.constant 0 : index
    %15 = vector.load %arg6[%c0_12, %c0_13] : memref<32x8xf32, #tpu.memory_space<vmem>>, vector<32x8xf32>
    %cst_14 = arith.constant dense<0.000000e+00> : vector<8x8xf32>
    %16 = tpu.matmul %14, %15, %cst_14 {dimension_numbers = #tpu.dot_dimension_numbers<[1], [0], [0], [1], [0, 0, 1, 1], [], []>} : vector<8x32xf32>, vector<32x8xf32>, vector<8x8xf32> -> vector<8x8xf32>
    %c0_15 = arith.constant 0 : index
    %c0_16 = arith.constant 0 : index
    %17 = vector.load %arg7[%c0_15, %c0_16] : memref<1x8xf32, #tpu.memory_space<vmem>>, vector<1x8xf32>
    %18 = vector.broadcast %17 : vector<1x8xf32> to vector<8x8xf32>
    %19 = arith.addf %16, %18 : vector<8x8xf32>
    %20 = math.tanh %19 : vector<8x8xf32>
    %c0_17 = arith.constant 0 : index
    %c0_18 = arith.constant 0 : index
    %21 = vector.load %arg8[%c0_17, %c0_18] : memref<8x8xf32, #tpu.memory_space<vmem>>, vector<8x8xf32>
    tpu.vector_store %arg8[%c0_17, %c0_18], %20 {strides = array<i32>} : memref<8x8xf32, #tpu.memory_space<vmem>>, vector<8x8xf32>,
    return
  }
  func.func @transform_0(%arg0: i32) -> (i32, i32) {
    %c0_i32 = arith.constant 0 : i32
    %c0_i32_0 = arith.constant 0 : i32
    return %arg0, %c0_i32 : i32, i32
  }
  func.func @transform_1(%arg0: i32) -> (i32, i32) {
    %c0_i32 = arith.constant 0 : i32
    %c0_i32_0 = arith.constant 0 : i32
    %c0_i32_1 = arith.constant 0 : i32
    return %c0_i32, %c0_i32_0 : i32, i32
  }
  func.func @transform_2(%arg0: i32) -> (i32, i32) {
    %c0_i32 = arith.constant 0 : i32
    %c0_i32_0 = arith.constant 0 : i32
    %c0_i32_1 = arith.constant 0 : i32
    return %c0_i32, %c0_i32_0 : i32, i32
  }
  func.func @transform_3(%arg0: i32) -> (i32, i32) {
    %c0_i32 = arith.constant 0 : i32
    %c0_i32_0 = arith.constant 0 : i32
    %c0_i32_1 = arith.constant 0 : i32
    return %c0_i32, %c0_i32_0 : i32, i32
  }
  func.func @transform_4(%arg0: i32) -> (i32, i32) {
    %c0_i32 = arith.constant 0 : i32
    %c0_i32_0 = arith.constant 0 : i32
    %c0_i32_1 = arith.constant 0 : i32
    return %c0_i32, %c0_i32_0 : i32, i32
  }
  func.func @transform_5(%arg0: i32) -> (i32, i32) {
    %c0_i32 = arith.constant 0 : i32
    %c0_i32_0 = arith.constant 0 : i32
    %c0_i32_1 = arith.constant 0 : i32
    return %c0_i32, %c0_i32_0 : i32, i32
  }
  func.func @transform_6(%arg0: i32) -> (i32, i32) {
    %c0_i32 = arith.constant 0 : i32
    %c0_i32_0 = arith.constant 0 : i32
    %c0_i32_1 = arith.constant 0 : i32
    return %c0_i32, %c0_i32_0 : i32, i32
  }
  func.func @transform_7(%arg0: i32) -> (i32, i32) {
    %c0_i32 = arith.constant 0 : i32
    %c0_i32_0 = arith.constant 0 : i32
    return %arg0, %c0_i32 : i32, i32
  }
}

</mosaic_0001>

<bundles_post_ra>
// kernel: tpu_custom_call.1
= control target key start
LH: loop header
LB: loop body
LE: loop exit
PB: predicated region body
PF: predicated region fallthrough
CT: control target
= control target key end

     0   :  { %12 = vsyncpa [#allocation3], 0  ;;  %s544_s0 = inlined_call_operand.vmem [shape: f32[8,16], index: 0, kind: input, shape index: {}]   ;;  %s545_s1 = inlined_call_operand.hbm [shape: f32[16,32], index: 1, kind: input, shape index: {}]   ;;  %s546_s2 = inlined_call_operand.vmem [shape: f32[1,32], index: 2, kind: input, shape index: {}]   ;;  %s547_s3 = inlined_call_operand.vmem [shape: f32[32,32], index: 3, kind: input, shape index: {}]   ;;  %s548_s4 = inlined_call_operand.hbm [shape: f32[1,32], index: 4, kind: input, shape index: {}]   ;;  %s549_s5 = inlined_call_operand.vmem [shape: f32[32,8], index: 5, kind: input, shape index: {}]   ;;  %s550_s6 = inlined_call_operand.vmem [shape: f32[1,8], index: 6, kind: input, shape index: {}]   ;;  %s551_s7 = inlined_call_operand.hbm [shape: f32[8,8], index: 7, kind: output, shape index: {}]  }
   0x1   :  { %13 = vsyncpa [#allocation6], 0 }
   0x2   :  { %14 = vsyncpa [#allocation4], 0  ;;  %s450_s24 = smov [#allocation2]  }
   0x3   :  { %s22_s25 = sshll.u32 %s450_s24, 4  ;;  %s23_s25 = int_to_ptr.vmem [resolvable:$true] %s22_s25 }
   0x4   :  { %s392_s26 = scalar_lea.vmem %s23_s25, 256  ;;  %p397_p1 = scmp.lt.s32.totalorder %s23_s25, %s23_s25 }
   0x5   :  { %p393_p0 = scmp.ne.s32.totalorder %s23_s25, %s392_s26  ;;  %p398_p2 = scmp.lt.s32.totalorder %s392_s26, %s392_s26 }
   0x7   :  { %p399_p3 = por %p398_p2, %p397_p1 }
   0x9   :  { %p400_p4 = pnand %p399_p3, %p393_p0 }
   0xb   :  { %403 = shalt.err (!%p400_p4)
}
   0xc   :  { %s451_s27 = smov 128   ;;  %s452_s28 = smov 8  }
   0xd   :  { %28 = dma.hbm_to_vmem [thread:$0]  %s545_s1, 256, %s23_s25, [#allocation3], %s451_s27, %s451_s27, %s452_s28  }
   0xe   :  { %s453_s8 = smov [#allocation5]  }
   0xf   :  { %s39_s9 = sshll.u32 %s453_s8, 4  ;;  %s40_s9 = int_to_ptr.vmem [resolvable:$true] %s39_s9 }
  0x10   :  { %s412_s10 = scalar_lea.vmem %s40_s9, 16  ;;  %s416_s11 = scalar_lea.vmem %s40_s9, 32 }
  0x11   :  { %p413_p5 = scmp.ne.s32.totalorder %s40_s9, %s412_s10  ;;  %p417_p6 = scmp.lt.s32.totalorder %s40_s9, %s40_s9 }
  0x12   :  { %p418_p7 = scmp.lt.s32.totalorder %s416_s11, %s412_s10 }
  0x14   :  { %p419_p8 = por %p418_p7, %p417_p6 }
  0x16   :  { %p420_p9 = pnand %p419_p8, %p413_p5 }
  0x18   :  { %423 = shalt.err (!%p420_p9)
}
  0x19   :  { %42 = dma.hbm_to_vmem [thread:$0]  %s548_s4, 16, %s40_s9, [#allocation6]  }
  0x1a   :  { %444 = dma.done.wait [#allocation3], 256  }
  0x1b   :  { %445 = vsyncadd [#allocation3], 4294967040 }
  0x1c   :  { %446 = dma.done.wait [#allocation6], 16  }
  0x1d   :  { %447 = vsyncadd [#allocation6], 4294967280  ;;  %v454_v0 = vmov 0.0   ;;  %vm455_vm0 = vmmov 0   ;;  %v55_v1 = vld [vmem:[#allocation2 + $0x8] sm:$0xff]  ;;  %v54_v2 = vld [vmem:[#allocation2] sm:$0xff] }
  0x1e   :  { %346 = vmatprep.subr.mxu0 %v454_v0  ;;  %350 = vmatprep.mubr.msk.f32.mxu0 %vm455_vm0, %v454_v0  ;;  %v53_v3 = vld [vmem:[%s544_s0] sm:$0xff]  ;;  %vm63_vm1 = vcmask 130048   ;;  %v141_v4 = vld [vmem:[%s547_s3 + $0x18] sm:$0xff]  ;;  %v140_v5 = vld [vmem:[%s547_s3 + $0x10] sm:$0xff]  ;;  %vm149_vm2 = vcmask 261120   ;;  %s456_s8 = smov [#allocation7]  }
  0x1f   :  { %353 = vmatprep.subr.mxu1 %v454_v0  ;;  %361 = vmatprep.mubr.msk.f32.mxu1 %vm455_vm0, %v454_v0  ;;  %v139_v6 = vld [vmem:[%s547_s3 + $0x8] sm:$0xff]  ;;  %v138_v7 = vld [vmem:[%s547_s3] sm:$0xff]  ;;  %v227_v8 = vld [vmem:[%s549_s5 + $0x18] sm:$0xff]  ;;  %s317_s9 = sshll.u32 %s456_s8, 4  ;;  %vm309_vm3 = vcmask 64512   ;;  %s318_s9 = int_to_ptr.vmem [resolvable:$true] %s317_s9 }
  0x20   :  { %347 = vmatpush3.msra.mxu0 %v55_v1  ;;  %354 = vmatpush3.msra.mxu1 %v141_v4  ;;  %v327_v9 = vld [vmem:[%s546_s2] ss:$0 sm:$0xff]  ;;  %v226_v14 = vld [vmem:[%s549_s5 + $0x10] sm:$0xff]  ;;  %v225_v15 = vld [vmem:[%s549_s5 + $0x8] sm:$0xff]  ;;  %p429_p11 = scmp.lt.s32.totalorder %s318_s9, %s318_s9 }
  0x21   :  { %348 = vmatprep.subr.mxu0 %v454_v0  ;;  %355 = vmatprep.subr.mxu1 %v454_v0  ;;  %v224_v16 = vld [vmem:[%s549_s5] sm:$0xff]  ;;  %v329_v17 = vld [vmem:[#allocation5] ss:$0 sm:$0xff]  ;;  %s424_s5 = scalar_lea.vmem %s318_s9, 128 }
  0x22   :  { %349 = vmatpush3.msra.mxu0 %v54_v2  ;;  %356 = vmatpush3.msra.mxu1 %v140_v5  ;;  %v331_v22 = vld [vmem:[%s550_s6] ss:$0 sm:$0xff]  ;;  %p425_p10 = scmp.ne.s32.totalorder %s318_s9, %s424_s5  ;;  %p430_p12 = scmp.lt.s32.totalorder %s424_s5, %s424_s5 }
  0x23   :  { %351 = vmatmul.mubr.msk.f32.vlgmr.msra.gmra.mxu0 %vm63_vm1, %v53_v3  ;;  %364 = vmatprep.subr.mxu0 %v454_v0 }
  0x24   :  { %372 = vmatprep.mubr.msk.f32.mxu0 %vm455_vm0, %v454_v0  ;;  %357 = vmatprep.subr.mxu1 %v454_v0  ;;  %p431_p13 = por %p430_p12, %p429_p11 }
  0x25   :  { %358 = vmatpush3.msra.mxu1 %v139_v6  ;;  %365 = vmatpush3.msra.mxu0 %v227_v8 }
  0x26   :  { %359 = vmatprep.subr.mxu1 %v454_v0  ;;  %366 = vmatprep.subr.mxu0 %v454_v0  ;;  %p432_p0 = pnand %p431_p13, %p425_p10 }
  0x27   :  { %360 = vmatpush3.msra.mxu1 %v138_v7  ;;  %367 = vmatpush3.msra.mxu0 %v226_v14 }
  0x28   :  { %368 = vmatprep.subr.mxu0 %v454_v0 }
  0x29   :  { %369 = vmatpush3.msra.mxu0 %v225_v15 }
  0x2a   :  { %370 = vmatprep.subr.mxu0 %v454_v0 }
  0x2b   :  { %371 = vmatpush3.msra.mxu0 %v224_v16 }
  0xe3   :  { %v133_v10 = vpop.f32.mrf.mxu0 }
  0xe4   :  { %v134_v11 = vadd.f32 %v327_v9, %v133_v10 }
  0xe5   :  { %v352_v12 = vpop.f32.mrf.mxu0 }
  0xe6   :  { %v137_v13 = vmax.f32 %v134_v11, 0.0 }
  0xe8   :  { %362 = vmatmul.mubr.msk.f32.vlgmr.msra.gmra.mxu1 %vm149_vm2, %v137_v13 }
 0x1a8   :  { %v219_v18 = vpop.f32.mrf.mxu1 }
 0x1a9   :  { %v220_v19 = vadd.f32 %v329_v17, %v219_v18 }
 0x1aa   :  { %v363_v20 = vpop.f32.mrf.mxu1 }
 0x1ab   :  { %v223_v21 = vmax.f32 %v220_v19, 0.0 }
 0x1ad   :  { %373 = vmatmul.mubr.msk.f32.vlgmr.msra.gmra.mxu0 %vm149_vm2, %v223_v21 }
 0x26d   :  { %v304_v23 = vpop.f32.mrf.mxu0 }
 0x26e   :  { %v305_v24 = vadd.f32 %v331_v22, %v304_v23 }
 0x26f   :  { %v374_v25 = vpop.f32.mrf.mxu0 }
 0x270   :  { %382 = vtanh.f32 %v305_v24 }
 0x27d   :  { %v383_v26 = vpop.eup %382 }
 0x27e   :  { %310 = vst.msk [vmem:[#allocation7] sm:$0xff] %vm309_vm3, %v383_v26 }
 0x27f   :  { %435 = shalt.err (!%p432_p0)
}
 0x280   :  { %320 = dma.vmem_to_hbm [thread:$0]  %s318_s9, 128, %s551_s7, [#allocation4]  }
 0x281   :  { %448 = dma.done.wait [#allocation4], 128  }
 0x282   :  { %449 = vsyncadd [#allocation4], 4294967168 }
 0x283   :  { %324 = vsyncpa [#allocation3], 1 }
 0x284   :  { %325 = vsyncpa [#allocation6], 1 }
 0x285   :  { %326 = vsyncpa [#allocation4], 1 }

</bundles_post_ra>
